<compile_context>
chip_gen: v5e
topology: v5e:2x2
jax: 0.10.0
libtpu: 0.0.40
codegen_flags: <defaults>
</compile_context>

<pallas_src>
import functools
import math

import jax
import jax.numpy as jnp
from jax import lax
from jax.experimental import pallas as pl
from jax.experimental.pallas import tpu as pltpu

EPS = 1e-5
FINAL_SLOPE = 0.01          # default negative_slope of the final F.leaky_relu_
MXU_DTYPE = jnp.bfloat16    # MXU operand dtype (accumulation is always f32)


# ----------------------------- in-kernel helpers -----------------------------

def _leaky(x):
    return jnp.where(x >= 0, x, FINAL_SLOPE * x)


def _conv3(h, w_ref):
    """Fused 3-tap conv1d (stride 1, pad 1, no bias) as one MXU matmul.

    h: [C, L] f32 activations.  w_ref: [Cout, 3*C] fused weights with tap-major
    columns [w[:,:,0] | w[:,:,1] | w[:,:,2]].  Returns [Cout, L] f32.
    """
    C, L = h.shape
    zero = jnp.zeros((C, 1), jnp.float32)
    h_m1 = jnp.concatenate([zero, h[:, :L - 1]], axis=1)   # h[l-1], zero at l=0
    h_p1 = jnp.concatenate([h[:, 1:], zero], axis=1)       # h[l+1], zero at l=L-1
    taps = jnp.concatenate([h_m1, h, h_p1], axis=0).astype(MXU_DTYPE)  # [3C, L]
    return jnp.dot(w_ref[...], taps, preferred_element_type=jnp.float32)


def _stats(y):
    """Per-channel partial [sum, sum-of-squares] over this tile's L axis."""
    s = jnp.sum(y, axis=1, keepdims=True)
    ss = jnp.sum(y * y, axis=1, keepdims=True)
    return jnp.concatenate([s, ss], axis=1)                # [Cout, 2]


# --------------------------------- kernels -----------------------------------

def _conv_stats_kernel(x_ref, w_ref, y_ref, st_ref):
    y = _conv3(x_ref[...], w_ref)
    y_ref[...] = y
    st_ref[...] = _stats(y)


def _bn_conv_stats_kernel(u_ref, sc_ref, sh_ref, w_ref, y_ref, st_ref):
    h = u_ref[...] * sc_ref[...] + sh_ref[...]   # folded BatchNorm: one FMA/elem
    y = _conv3(h, w_ref)
    y_ref[...] = y
    st_ref[...] = _stats(y)


def _bn_res_conv_stats_kernel(use_proj, u_ref, sc_ref, sh_ref, r_ref, *refs):
    if use_proj:
        wp_ref, bp_ref, w_ref, z_ref, y_ref, st_ref = refs
        r = jnp.dot(wp_ref[...], r_ref[...].astype(MXU_DTYPE),
                    preferred_element_type=jnp.float32) + bp_ref[...]
    else:
        w_ref, z_ref, y_ref, st_ref = refs
        r = r_ref[...]
    h = u_ref[...] * sc_ref[...] + sh_ref[...]
    z = _leaky(r + h)            # end of residual block A
    z_ref[...] = z
    y = _conv3(z, w_ref)         # fused first conv of residual block B
    y_ref[...] = y
    st_ref[...] = _stats(y)


def _bn_res_kernel(u_ref, sc_ref, sh_ref, r_ref, o_ref):
    h = u_ref[...] * sc_ref[...] + sh_ref[...]
    o_ref[...] = _leaky(r_ref[...] + h)


# ----------------------------- pallas_call plumbing ---------------------------

_COMPILER_PARAMS = pltpu.CompilerParams(
    dimension_semantics=("parallel",),     # shard the N grid axis across TCs
    vmem_limit_bytes=32 * 1024 * 1024,     # explicit budget; tiles here are tiny
)


def _tile_spec(C, L):
    return pl.BlockSpec((None, C, L), lambda i: (i, 0, 0))


def _stats_spec(C):
    return pl.BlockSpec((None, C, 2), lambda i: (i, 0, 0))


def _full_spec(shape):
    nd = len(shape)
    return pl.BlockSpec(tuple(shape), lambda i, _nd=nd: (0,) * _nd)


def _nbytes(*arrays):
    return int(sum(a.size * a.dtype.itemsize for a in arrays))


def _pcall(kernel, grid, in_specs, out_specs, out_shape, inputs, flops):
    outs = out_shape if isinstance(out_shape, tuple) else (out_shape,)
    out_bytes = sum(math.prod(o.shape) * jnp.dtype(o.dtype).itemsize for o in outs)
    cost = pl.CostEstimate(flops=int(flops), transcendentals=0,
                           bytes_accessed=int(_nbytes(*inputs) + out_bytes))
    return pl.pallas_call(
        kernel,
        grid=grid,
        in_specs=list(in_specs),
        out_specs=out_specs,
        out_shape=out_shape,
        compiler_params=_COMPILER_PARAMS,
        cost_estimate=cost,
    )(*inputs)


def _conv_stats(x, w, Cout):
    N, Cin, L = x.shape
    return _pcall(
        _conv_stats_kernel, (N,),
        [_tile_spec(Cin, L), _full_spec(w.shape)],
        (_tile_spec(Cout, L), _stats_spec(Cout)),
        (jax.ShapeDtypeStruct((N, Cout, L), jnp.float32),
         jax.ShapeDtypeStruct((N, Cout, 2), jnp.float32)),
        (x, w),
        flops=2 * N * L * Cout * w.shape[1] + 4 * N * L * Cout,
    )


def _bn_conv_stats(u, scale, shift, w, Cout):
    N, C, L = u.shape
    return _pcall(
        _bn_conv_stats_kernel, (N,),
        [_tile_spec(C, L), _full_spec(scale.shape), _full_spec(shift.shape),
         _full_spec(w.shape)],
        (_tile_spec(Cout, L), _stats_spec(Cout)),
        (jax.ShapeDtypeStruct((N, Cout, L), jnp.float32),
         jax.ShapeDtypeStruct((N, Cout, 2), jnp.float32)),
        (u, scale, shift, w),
        flops=2 * N * L * (C + Cout * w.shape[1]) + 4 * N * L * Cout,
    )


def _bn_res_conv_stats(u, scale, shift, res, w, Cout, proj):
    N, C, L = u.shape
    Cr = res.shape[1]
    in_specs = [_tile_spec(C, L), _full_spec(scale.shape), _full_spec(shift.shape),
                _tile_spec(Cr, L)]
    inputs = [u, scale, shift, res]
    if proj is not None:
        wp, bp = proj
        in_specs += [_full_spec(wp.shape), _full_spec(bp.shape)]
        inputs += [wp, bp]
    in_specs.append(_full_spec(w.shape))
    inputs.append(w)
    return _pcall(
        functools.partial(_bn_res_conv_stats_kernel, proj is not None),
        (N,),
        in_specs,
        (_tile_spec(Cout, L), _tile_spec(Cout, L), _stats_spec(Cout)),
        (jax.ShapeDtypeStruct((N, Cout, L), jnp.float32),
         jax.ShapeDtypeStruct((N, Cout, L), jnp.float32),
         jax.ShapeDtypeStruct((N, Cout, 2), jnp.float32)),
        tuple(inputs),
        flops=2 * N * L * Cout * (w.shape[1] + (Cr if proj is not None else 0))
              + 8 * N * L * Cout,
    )


def _bn_res(u, scale, shift, res):
    N, C, L = u.shape
    return _pcall(
        _bn_res_kernel, (N,),
        [_tile_spec(C, L), _full_spec(scale.shape), _full_spec(shift.shape),
         _tile_spec(C, L)],
        _tile_spec(C, L),
        jax.ShapeDtypeStruct((N, C, L), jnp.float32),
        (u, scale, shift, res),
        flops=6 * N * L * C,
    )


# ------------------------------ host wrapper ---------------------------------

def _stats_to_affine(stats, gamma, beta, count):
    """Global folded-BN scale/shift from per-tile [sum, sumsq] partials (f32)."""
    tot = jnp.sum(stats, axis=0)                                   # (C, 2), tiny
    mean = tot[:, 0] / count
    var = jnp.maximum(tot[:, 1] / count - mean * mean, 0.0)        # biased var
    scale = gamma * lax.rsqrt(var + EPS)
    shift = beta - mean * scale
    return scale.reshape(-1, 1), shift.reshape(-1, 1)


def res_double_conv(x, kp, same_shape):
    """x: [N, C_in, L] (PyTorch NCL). Returns [N, C_out, L]."""
    x = x.astype(jnp.float32)
    N, Cin, L = x.shape
    Cout = kp["g1a"].shape[0]
    count = float(N * L)

    # ---- residual block A ----------------------------------------------------
    y1, st1 = _conv_stats(x, kp["w1a"], Cout)
    s1, t1 = _stats_to_affine(st1, kp["g1a"], kp["b1a"], count)
    y2, st2 = _bn_conv_stats(y1, s1, t1, kp["w2a"], Cout)
    s2, t2 = _stats_to_affine(st2, kp["g2a"], kp["b2a"], count)
    proj = None if same_shape else (kp["w3a"], kp["bias3a"])
    # bn2a + residual(+1x1 proj) + leaky(0.01) -> z1, fused with conv1b + stats
    z1, y3, st3 = _bn_res_conv_stats(y2, s2, t2, x, kp["w1b"], Cout, proj)

    # ---- residual block B ----------------------------------------------------
    s3, t3 = _stats_to_affine(st3, kp["g1b"], kp["b1b"], count)
    y4, st4 = _bn_conv_stats(y3, s3, t3, kp["w2b"], Cout)
    s4, t4 = _stats_to_affine(st4, kp["g2b"], kp["b2b"], count)
    return _bn_res(y4, s4, t4, z1)


def _to_kernel_params(raw):
    """PyTorch-shaped params -> kernel layout (fused bf16 conv weights)."""
    kp = {}
    for name in ("w1a", "w2a", "w1b", "w2b"):   # [O, I, 3] -> fused [O, 3*I]
        w = raw[name]
        kp[name] = jnp.concatenate([w[:, :, 0], w[:, :, 1], w[:, :, 2]],
                                   axis=1).astype(MXU_DTYPE)
    for name in ("g1a", "b1a", "g2a", "b2a", "g1b", "b1b", "g2b", "b2b"):
        kp[name] = raw[name].astype(jnp.float32)
    kp["w3a"] = raw["w3a"][:, :, 0].astype(MXU_DTYPE)               # [O, I]
    kp["bias3a"] = raw["bias3a"].reshape(-1, 1).astype(jnp.float32)  # [O, 1]
    return kp


# --------------------------- pure-JAX reference -------------------------------

def _conv1d_ref(x_ncl, w_oik, bias=None, padding=1):
    y = lax.conv_general_dilated(x_ncl, w_oik, window_strides=(1,),
                                 padding=[(padding, padding)],
                                 dimension_numbers=("NCH", "OIH", "NCH"))
    if bias is not None:
        y = y + bias.reshape(1, -1, 1)
    return y


def _bn_ref(x_ncl, gamma, beta):
    mean = jnp.mean(x_ncl, axis=(0, 2), keepdims=True)
    var = jnp.mean(jnp.square(x_ncl - mean), axis=(0, 2), keepdims=True)
    return ((x_ncl - mean) / jnp.sqrt(var + EPS)
            * gamma.reshape(1, -1, 1) + beta.reshape(1, -1, 1))


def _ref_res_block(x, w1, g1, b1, w2, g2, b2, w3=None, bias3=None):
    out = _bn_ref(_conv1d_ref(x, w1), g1, b1)   # inner leaky slope 1.0 = identity
    out = _bn_ref(_conv1d_ref(out, w2), g2, b2)
    if w3 is not None:
        x = _conv1d_ref(x, w3, bias=bias3, padding=0)
    y = x + out
    return jnp.where(y >= 0, y, FINAL_SLOPE * y)


def _ref_forward(x_ncl, raw, same_shape):
    if same_shape:
        y = _ref_res_block(x_ncl, raw["w1a"], raw["g1a"], raw["b1a"],
                           raw["w2a"], raw["g2a"], raw["b2a"])
    else:
        y = _ref_res_block(x_ncl, raw["w1a"], raw["g1a"], raw["b1a"],
                           raw["w2a"], raw["g2a"], raw["b2a"],
                           raw["w3a"], raw["bias3a"])
    return _ref_res_block(y, raw["w1b"], raw["g1b"], raw["b1b"],
                          raw["w2b"], raw["g2b"], raw["b2b"])


# ---------------------------------- main --------------------------------------

if __name__ == "__main__":
    N, Cin, Cout, L = 2, 4, 8, 16
    same_shape = (Cin == Cout)   # False -> the 1x1 projection path is exercised

    ks = iter(jax.random.split(jax.random.PRNGKey(0), 20))

    def nrm(shape, scale=0.2):
        return (scale * jax.random.normal(next(ks), shape)).astype(jnp.float32)

    raw = {
        "w1a": nrm((Cout, Cin, 3)),
        "g1a": 1.0 + nrm((Cout,), 0.1), "b1a": nrm((Cout,), 0.1),
        "w2a": nrm((Cout, Cout, 3)),
        "g2a": 1.0 + nrm((Cout,), 0.1), "b2a": nrm((Cout,), 0.1),
        "w3a": nrm((Cout, Cin, 1)), "bias3a": nrm((Cout,), 0.1),
        "w1b": nrm((Cout, Cout, 3)),
        "g1b": 1.0 + nrm((Cout,), 0.1), "b1b": nrm((Cout,), 0.1),
        "w2b": nrm((Cout, Cout, 3)),
        "g2b": 1.0 + nrm((Cout,), 0.1), "b2b": nrm((Cout,), 0.1),
    }
    x = jax.random.normal(next(ks), (N, Cin, L), jnp.float32)

    fwd = jax.jit(functools.partial(res_double_conv, same_shape=same_shape))
    out = jax.block_until_ready(fwd(x, _to_kernel_params(raw)))
    ref = _ref_forward(x, raw, same_shape)

    assert out.shape == (N, Cout, L), out.shape
    max_err = float(jnp.max(jnp.abs(out - ref)))
    # bf16 MXU operands vs. an all-f32 reference: allow a few bf16 ulps of drift
    # accumulated across 4 conv + 4 BN layers.
    if max_err > 5e-2:
        raise AssertionError(f"kernel/reference mismatch, max abs err = {max_err}")
    print("KERNEL_OK")
</pallas_src>

<mosaic_0001>
module attributes {stable_mosaic.version = 11 : i64} {
  func.func @_conv_stats_kernel(%arg0: i32, %arg1: memref<1x4x16xf32, #tpu.memory_space<vmem>>, %arg2: memref<8x12xbf16, #tpu.memory_space<vmem>>, %arg3: memref<1x8x16xf32, #tpu.memory_space<vmem>>, %arg4: memref<1x8x2xf32, #tpu.memory_space<vmem>>) attributes {dimension_semantics = [#tpu.dimension_semantics<parallel>], iteration_bounds = array<i64: 2>, scalar_prefetch = 0 : i64, scratch_operands = 0 : i64, tpu.core_type = #tpu.core_type<tc>, window_params = [{transform_indices = @transform_0, window_bounds = array<i64: 1, 4, 16>}, {pipeline_mode = #tpu.pipeline_mode<synchronous>, transform_indices = @transform_1, window_bounds = array<i64: 8, 12>}, {transform_indices = @transform_2, window_bounds = array<i64: 1, 8, 16>}, {transform_indices = @transform_3, window_bounds = array<i64: 1, 8, 2>}]} {
    %c0 = arith.constant 0 : index
    %c0_0 = arith.constant 0 : index
    %c0_1 = arith.constant 0 : index
    %0 = vector.load %arg1[%c0, %c0_0, %c0_1] : memref<1x4x16xf32, #tpu.memory_space<vmem>>, vector<1x4x16xf32>
    %1 = vector.shape_cast %0 : vector<1x4x16xf32> to vector<4x16xf32>
    %cst = arith.constant 0.000000e+00 : f32
    %2 = vector.broadcast %cst : f32 to vector<4x1xf32>
    %3 = vector.extract_strided_slice %1 {offsets = [0, 0], sizes = [4, 15], strides = [1, 1]} : vector<4x16xf32> to vector<4x15xf32>
    %4 = tpu.concatenate %2, %3 in 1 : vector<4x1xf32>, vector<4x15xf32> -> vector<4x16xf32>
    %5 = vector.extract_strided_slice %1 {offsets = [0, 1], sizes = [4, 15], strides = [1, 1]} : vector<4x16xf32> to vector<4x15xf32>
    %6 = tpu.concatenate %5, %2 in 1 : vector<4x15xf32>, vector<4x1xf32> -> vector<4x16xf32>
    %7 = tpu.concatenate %4, %1, %6 in 0 : vector<4x16xf32>, vector<4x16xf32>, vector<4x16xf32> -> vector<12x16xf32>
    %8 = arith.truncf %7 : vector<12x16xf32> to vector<12x16xbf16>
    %c0_2 = arith.constant 0 : index
    %c0_3 = arith.constant 0 : index
    %9 = vector.load %arg2[%c0_2, %c0_3] : memref<8x12xbf16, #tpu.memory_space<vmem>>, vector<8x12xbf16>
    %cst_4 = arith.constant dense<0.000000e+00> : vector<8x16xf32>
    %10 = tpu.matmul %9, %8, %cst_4 {dimension_numbers = #tpu.dot_dimension_numbers<[1], [0], [0], [1], [0, 0, 1, 1], [], []>} : vector<8x12xbf16>, vector<12x16xbf16>, vector<8x16xf32> -> vector<8x16xf32>
    %c0_5 = arith.constant 0 : index
    %c0_6 = arith.constant 0 : index
    %c0_7 = arith.constant 0 : index
    %11 = vector.load %arg3[%c0_5, %c0_6, %c0_7] : memref<1x8x16xf32, #tpu.memory_space<vmem>>, vector<1x8x16xf32>
    %12 = vector.shape_cast %11 : vector<1x8x16xf32> to vector<8x16xf32>
    %13 = vector.shape_cast %10 : vector<8x16xf32> to vector<1x8x16xf32>
    tpu.vector_store %arg3[%c0_5, %c0_6, %c0_7], %13 {strides = array<i32>} : memref<1x8x16xf32, #tpu.memory_space<vmem>>, vector<1x8x16xf32>,
    %cst_8 = arith.constant dense<0.000000e+00> : vector<8xf32>
    %14 = vector.multi_reduction <add>, %10, %cst_8 [1] : vector<8x16xf32> to vector<8xf32>
    %15 = vector.shape_cast %14 : vector<8xf32> to vector<8x1xf32>
    %16 = arith.mulf %10, %10 : vector<8x16xf32>
    %cst_9 = arith.constant dense<0.000000e+00> : vector<8xf32>
    %17 = vector.multi_reduction <add>, %16, %cst_9 [1] : vector<8x16xf32> to vector<8xf32>
    %18 = vector.shape_cast %17 : vector<8xf32> to vector<8x1xf32>
    %19 = tpu.concatenate %15, %18 in 1 : vector<8x1xf32>, vector<8x1xf32> -> vector<8x2xf32>
    %c0_10 = arith.constant 0 : index
    %c0_11 = arith.constant 0 : index
    %c0_12 = arith.constant 0 : index
    %20 = vector.load %arg4[%c0_10, %c0_11, %c0_12] : memref<1x8x2xf32, #tpu.memory_space<vmem>>, vector<1x8x2xf32>
    %21 = vector.shape_cast %20 : vector<1x8x2xf32> to vector<8x2xf32>
    %22 = vector.shape_cast %19 : vector<8x2xf32> to vector<1x8x2xf32>
    tpu.vector_store %arg4[%c0_10, %c0_11, %c0_12], %22 {strides = array<i32>} : memref<1x8x2xf32, #tpu.memory_space<vmem>>, vector<1x8x2xf32>,
    return
  }
  func.func @transform_0(%arg0: i32) -> (i32, i32, i32) {
    %c0_i32 = arith.constant 0 : i32
    %c0_i32_0 = arith.constant 0 : i32
    %c0_i32_1 = arith.constant 0 : i32
    return %arg0, %c0_i32, %c0_i32_0 : i32, i32, i32
  }
  func.func @transform_1(%arg0: i32) -> (i32, i32) {
    %c0_i32 = arith.constant 0 : i32
    %c0_i32_0 = arith.constant 0 : i32
    %c0_i32_1 = arith.constant 0 : i32
    return %c0_i32, %c0_i32_0 : i32, i32
  }
  func.func @transform_2(%arg0: i32) -> (i32, i32, i32) {
    %c0_i32 = arith.constant 0 : i32
    %c0_i32_0 = arith.constant 0 : i32
    %c0_i32_1 = arith.constant 0 : i32
    return %arg0, %c0_i32, %c0_i32_0 : i32, i32, i32
  }
  func.func @transform_3(%arg0: i32) -> (i32, i32, i32) {
    %c0_i32 = arith.constant 0 : i32
    %c0_i32_0 = arith.constant 0 : i32
    %c0_i32_1 = arith.constant 0 : i32
    return %arg0, %c0_i32, %c0_i32_0 : i32, i32, i32
  }
}

module attributes {stable_mosaic.version = 11 : i64} {
  func.func @_bn_conv_stats_kernel(%arg0: i32, %arg1: memref<1x8x16xf32, #tpu.memory_space<vmem>>, %arg2: memref<8x1xf32, #tpu.memory_space<vmem>>, %arg3: memref<8x1xf32, #tpu.memory_space<vmem>>, %arg4: memref<8x24xbf16, #tpu.memory_space<vmem>>, %arg5: memref<1x8x16xf32, #tpu.memory_space<vmem>>, %arg6: memref<1x8x2xf32, #tpu.memory_space<vmem>>) attributes {dimension_semantics = [#tpu.dimension_semantics<parallel>], iteration_bounds = array<i64: 2>, scalar_prefetch = 0 : i64, scratch_operands = 0 : i64, tpu.core_type = #tpu.core_type<tc>, window_params = [{transform_indices = @transform_0, window_bounds = array<i64: 1, 8, 16>}, {pipeline_mode = #tpu.pipeline_mode<synchronous>, transform_indices = @transform_1, window_bounds = array<i64: 8, 1>}, {pipeline_mode = #tpu.pipeline_mode<synchronous>, transform_indices = @transform_2, window_bounds = array<i64: 8, 1>}, {pipeline_mode = #tpu.pipeline_mode<synchronous>, transform_indices = @transform_3, window_bounds = array<i64: 8, 24>}, {transform_indices = @transform_4, window_bounds = array<i64: 1, 8, 16>}, {transform_indices = @transform_5, window_bounds = array<i64: 1, 8, 2>}]} {
    %c0 = arith.constant 0 : index
    %c0_0 = arith.constant 0 : index
    %c0_1 = arith.constant 0 : index
    %0 = vector.load %arg1[%c0, %c0_0, %c0_1] : memref<1x8x16xf32, #tpu.memory_space<vmem>>, vector<1x8x16xf32>
    %1 = vector.shape_cast %0 : vector<1x8x16xf32> to vector<8x16xf32>
    %c0_2 = arith.constant 0 : index
    %c0_3 = arith.constant 0 : index
    %2 = vector.load %arg2[%c0_2, %c0_3] : memref<8x1xf32, #tpu.memory_space<vmem>>, vector<8x1xf32>
    %3 = vector.broadcast %2 : vector<8x1xf32> to vector<8x16xf32>
    %4 = arith.mulf %1, %3 : vector<8x16xf32>
    %c0_4 = arith.constant 0 : index
    %c0_5 = arith.constant 0 : index
    %5 = vector.load %arg3[%c0_4, %c0_5] : memref<8x1xf32, #tpu.memory_space<vmem>>, vector<8x1xf32>
    %6 = vector.broadcast %5 : vector<8x1xf32> to vector<8x16xf32>
    %7 = arith.addf %4, %6 : vector<8x16xf32>
    %cst = arith.constant 0.000000e+00 : f32
    %8 = vector.broadcast %cst : f32 to vector<8x1xf32>
    %9 = vector.extract_strided_slice %7 {offsets = [0, 0], sizes = [8, 15], strides = [1, 1]} : vector<8x16xf32> to vector<8x15xf32>
    %10 = tpu.concatenate %8, %9 in 1 : vector<8x1xf32>, vector<8x15xf32> -> vector<8x16xf32>
    %11 = vector.extract_strided_slice %7 {offsets = [0, 1], sizes = [8, 15], strides = [1, 1]} : vector<8x16xf32> to vector<8x15xf32>
    %12 = tpu.concatenate %11, %8 in 1 : vector<8x15xf32>, vector<8x1xf32> -> vector<8x16xf32>
    %13 = tpu.concatenate %10, %7, %12 in 0 : vector<8x16xf32>, vector<8x16xf32>, vector<8x16xf32> -> vector<24x16xf32>
    %14 = arith.truncf %13 : vector<24x16xf32> to vector<24x16xbf16>
    %c0_6 = arith.constant 0 : index
    %c0_7 = arith.constant 0 : index
    %15 = vector.load %arg4[%c0_6, %c0_7] : memref<8x24xbf16, #tpu.memory_space<vmem>>, vector<8x24xbf16>
    %cst_8 = arith.constant dense<0.000000e+00> : vector<8x16xf32>
    %16 = tpu.matmul %15, %14, %cst_8 {dimension_numbers = #tpu.dot_dimension_numbers<[1], [0], [0], [1], [0, 0, 1, 1], [], []>} : vector<8x24xbf16>, vector<24x16xbf16>, vector<8x16xf32> -> vector<8x16xf32>
    %c0_9 = arith.constant 0 : index
    %c0_10 = arith.constant 0 : index
    %c0_11 = arith.constant 0 : index
    %17 = vector.load %arg5[%c0_9, %c0_10, %c0_11] : memref<1x8x16xf32, #tpu.memory_space<vmem>>, vector<1x8x16xf32>
    %18 = vector.shape_cast %17 : vector<1x8x16xf32> to vector<8x16xf32>
    %19 = vector.shape_cast %16 : vector<8x16xf32> to vector<1x8x16xf32>
    tpu.vector_store %arg5[%c0_9, %c0_10, %c0_11], %19 {strides = array<i32>} : memref<1x8x16xf32, #tpu.memory_space<vmem>>, vector<1x8x16xf32>,
    %cst_12 = arith.constant dense<0.000000e+00> : vector<8xf32>
    %20 = vector.multi_reduction <add>, %16, %cst_12 [1] : vector<8x16xf32> to vector<8xf32>
    %21 = vector.shape_cast %20 : vector<8xf32> to vector<8x1xf32>
    %22 = arith.mulf %16, %16 : vector<8x16xf32>
    %cst_13 = arith.constant dense<0.000000e+00> : vector<8xf32>
    %23 = vector.multi_reduction <add>, %22, %cst_13 [1] : vector<8x16xf32> to vector<8xf32>
    %24 = vector.shape_cast %23 : vector<8xf32> to vector<8x1xf32>
    %25 = tpu.concatenate %21, %24 in 1 : vector<8x1xf32>, vector<8x1xf32> -> vector<8x2xf32>
    %c0_14 = arith.constant 0 : index
    %c0_15 = arith.constant 0 : index
    %c0_16 = arith.constant 0 : index
    %26 = vector.load %arg6[%c0_14, %c0_15, %c0_16] : memref<1x8x2xf32, #tpu.memory_space<vmem>>, vector<1x8x2xf32>
    %27 = vector.shape_cast %26 : vector<1x8x2xf32> to vector<8x2xf32>
    %28 = vector.shape_cast %25 : vector<8x2xf32> to vector<1x8x2xf32>
    tpu.vector_store %arg6[%c0_14, %c0_15, %c0_16], %28 {strides = array<i32>} : memref<1x8x2xf32, #tpu.memory_space<vmem>>, vector<1x8x2xf32>,
    return
  }
  func.func @transform_0(%arg0: i32) -> (i32, i32, i32) {
    %c0_i32 = arith.constant 0 : i32
    %c0_i32_0 = arith.constant 0 : i32
    %c0_i32_1 = arith.constant 0 : i32
    return %arg0, %c0_i32, %c0_i32_0 : i32, i32, i32
  }
  func.func @transform_1(%arg0: i32) -> (i32, i32) {
    %c0_i32 = arith.constant 0 : i32
    %c0_i32_0 = arith.constant 0 : i32
    %c0_i32_1 = arith.constant 0 : i32
    return %c0_i32, %c0_i32_0 : i32, i32
  }
  func.func @transform_2(%arg0: i32) -> (i32, i32) {
    %c0_i32 = arith.constant 0 : i32
    %c0_i32_0 = arith.constant 0 : i32
    %c0_i32_1 = arith.constant 0 : i32
    return %c0_i32, %c0_i32_0 : i32, i32
  }
  func.func @transform_3(%arg0: i32) -> (i32, i32) {
    %c0_i32 = arith.constant 0 : i32
    %c0_i32_0 = arith.constant 0 : i32
    %c0_i32_1 = arith.constant 0 : i32
    return %c0_i32, %c0_i32_0 : i32, i32
  }
  func.func @transform_4(%arg0: i32) -> (i32, i32, i32) {
    %c0_i32 = arith.constant 0 : i32
    %c0_i32_0 = arith.constant 0 : i32
    %c0_i32_1 = arith.constant 0 : i32
    return %arg0, %c0_i32, %c0_i32_0 : i32, i32, i32
  }
  func.func @transform_5(%arg0: i32) -> (i32, i32, i32) {
    %c0_i32 = arith.constant 0 : i32
    %c0_i32_0 = arith.constant 0 : i32
    %c0_i32_1 = arith.constant 0 : i32
    return %arg0, %c0_i32, %c0_i32_0 : i32, i32, i32
  }
}

module attributes {stable_mosaic.version = 11 : i64} {
  func.func @_bn_res_kernel(%arg0: i32, %arg1: memref<1x8x16xf32, #tpu.memory_space<vmem>>, %arg2: memref<8x1xf32, #tpu.memory_space<vmem>>, %arg3: memref<8x1xf32, #tpu.memory_space<vmem>>, %arg4: memref<1x8x16xf32, #tpu.memory_space<vmem>>, %arg5: memref<1x8x16xf32, #tpu.memory_space<vmem>>) attributes {dimension_semantics = [#tpu.dimension_semantics<parallel>], iteration_bounds = array<i64: 2>, scalar_prefetch = 0 : i64, scratch_operands = 0 : i64, tpu.core_type = #tpu.core_type<tc>, window_params = [{transform_indices = @transform_0, window_bounds = array<i64: 1, 8, 16>}, {pipeline_mode = #tpu.pipeline_mode<synchronous>, transform_indices = @transform_1, window_bounds = array<i64: 8, 1>}, {pipeline_mode = #tpu.pipeline_mode<synchronous>, transform_indices = @transform_2, window_bounds = array<i64: 8, 1>}, {transform_indices = @transform_3, window_bounds = array<i64: 1, 8, 16>}, {transform_indices = @transform_4, window_bounds = array<i64: 1, 8, 16>}]} {
    %c0 = arith.constant 0 : index
    %c0_0 = arith.constant 0 : index
    %c0_1 = arith.constant 0 : index
    %0 = vector.load %arg1[%c0, %c0_0, %c0_1] : memref<1x8x16xf32, #tpu.memory_space<vmem>>, vector<1x8x16xf32>
    %1 = vector.shape_cast %0 : vector<1x8x16xf32> to vector<8x16xf32>
    %c0_2 = arith.constant 0 : index
    %c0_3 = arith.constant 0 : index
    %2 = vector.load %arg2[%c0_2, %c0_3] : memref<8x1xf32, #tpu.memory_space<vmem>>, vector<8x1xf32>
    %3 = vector.broadcast %2 : vector<8x1xf32> to vector<8x16xf32>
    %4 = arith.mulf %1, %3 : vector<8x16xf32>
    %c0_4 = arith.constant 0 : index
    %c0_5 = arith.constant 0 : index
    %5 = vector.load %arg3[%c0_4, %c0_5] : memref<8x1xf32, #tpu.memory_space<vmem>>, vector<8x1xf32>
    %6 = vector.broadcast %5 : vector<8x1xf32> to vector<8x16xf32>
    %7 = arith.addf %4, %6 : vector<8x16xf32>
    %c0_6 = arith.constant 0 : index
    %c0_7 = arith.constant 0 : index
    %c0_8 = arith.constant 0 : index
    %8 = vector.load %arg4[%c0_6, %c0_7, %c0_8] : memref<1x8x16xf32, #tpu.memory_space<vmem>>, vector<1x8x16xf32>
    %9 = vector.shape_cast %8 : vector<1x8x16xf32> to vector<8x16xf32>
    %10 = arith.addf %9, %7 : vector<8x16xf32>
    %cst = arith.constant 0.000000e+00 : f32
    %11 = vector.broadcast %cst : f32 to vector<8x16xf32>
    %12 = arith.cmpf oge, %10, %11 : vector<8x16xf32>
    %cst_9 = arith.constant 0.00999999977 : f32
    %13 = vector.broadcast %cst_9 : f32 to vector<8x16xf32>
    %14 = arith.mulf %13, %10 : vector<8x16xf32>
    %15 = arith.select %12, %10, %14 : vector<8x16xi1>, vector<8x16xf32>
    %c0_10 = arith.constant 0 : index
    %c0_11 = arith.constant 0 : index
    %c0_12 = arith.constant 0 : index
    %16 = vector.load %arg5[%c0_10, %c0_11, %c0_12] : memref<1x8x16xf32, #tpu.memory_space<vmem>>, vector<1x8x16xf32>
    %17 = vector.shape_cast %16 : vector<1x8x16xf32> to vector<8x16xf32>
    %18 = vector.shape_cast %15 : vector<8x16xf32> to vector<1x8x16xf32>
    tpu.vector_store %arg5[%c0_10, %c0_11, %c0_12], %18 {strides = array<i32>} : memref<1x8x16xf32, #tpu.memory_space<vmem>>, vector<1x8x16xf32>,
    return
  }
  func.func @transform_0(%arg0: i32) -> (i32, i32, i32) {
    %c0_i32 = arith.constant 0 : i32
    %c0_i32_0 = arith.constant 0 : i32
    %c0_i32_1 = arith.constant 0 : i32
    return %arg0, %c0_i32, %c0_i32_0 : i32, i32, i32
  }
  func.func @transform_1(%arg0: i32) -> (i32, i32) {
    %c0_i32 = arith.constant 0 : i32
    %c0_i32_0 = arith.constant 0 : i32
    %c0_i32_1 = arith.constant 0 : i32
    return %c0_i32, %c0_i32_0 : i32, i32
  }
  func.func @transform_2(%arg0: i32) -> (i32, i32) {
    %c0_i32 = arith.constant 0 : i32
    %c0_i32_0 = arith.constant 0 : i32
    %c0_i32_1 = arith.constant 0 : i32
    return %c0_i32, %c0_i32_0 : i32, i32
  }
  func.func @transform_3(%arg0: i32) -> (i32, i32, i32) {
    %c0_i32 = arith.constant 0 : i32
    %c0_i32_0 = arith.constant 0 : i32
    %c0_i32_1 = arith.constant 0 : i32
    return %arg0, %c0_i32, %c0_i32_0 : i32, i32, i32
  }
  func.func @transform_4(%arg0: i32) -> (i32, i32, i32) {
    %c0_i32 = arith.constant 0 : i32
    %c0_i32_0 = arith.constant 0 : i32
    %c0_i32_1 = arith.constant 0 : i32
    return %arg0, %c0_i32, %c0_i32_0 : i32, i32, i32
  }
}

module attributes {stable_mosaic.version = 11 : i64} {
  func.func @_bn_res_conv_stats_kernel(%arg0: i32, %arg1: memref<1x8x16xf32, #tpu.memory_space<vmem>>, %arg2: memref<8x1xf32, #tpu.memory_space<vmem>>, %arg3: memref<8x1xf32, #tpu.memory_space<vmem>>, %arg4: memref<1x4x16xf32, #tpu.memory_space<vmem>>, %arg5: memref<8x4xbf16, #tpu.memory_space<vmem>>, %arg6: memref<8x1xf32, #tpu.memory_space<vmem>>, %arg7: memref<8x24xbf16, #tpu.memory_space<vmem>>, %arg8: memref<1x8x16xf32, #tpu.memory_space<vmem>>, %arg9: memref<1x8x16xf32, #tpu.memory_space<vmem>>, %arg10: memref<1x8x2xf32, #tpu.memory_space<vmem>>) attributes {dimension_semantics = [#tpu.dimension_semantics<parallel>], iteration_bounds = array<i64: 2>, scalar_prefetch = 0 : i64, scratch_operands = 0 : i64, tpu.core_type = #tpu.core_type<tc>, window_params = [{transform_indices = @transform_0, window_bounds = array<i64: 1, 8, 16>}, {pipeline_mode = #tpu.pipeline_mode<synchronous>, transform_indices = @transform_1, window_bounds = array<i64: 8, 1>}, {pipeline_mode = #tpu.pipeline_mode<synchronous>, transform_indices = @transform_2, window_bounds = array<i64: 8, 1>}, {transform_indices = @transform_3, window_bounds = array<i64: 1, 4, 16>}, {pipeline_mode = #tpu.pipeline_mode<synchronous>, transform_indices = @transform_4, window_bounds = array<i64: 8, 4>}, {pipeline_mode = #tpu.pipeline_mode<synchronous>, transform_indices = @transform_5, window_bounds = array<i64: 8, 1>}, {pipeline_mode = #tpu.pipeline_mode<synchronous>, transform_indices = @transform_6, window_bounds = array<i64: 8, 24>}, {transform_indices = @transform_7, window_bounds = array<i64: 1, 8, 16>}, {transform_indices = @transform_8, window_bounds = array<i64: 1, 8, 16>}, {transform_indices = @transform_9, window_bounds = array<i64: 1, 8, 2>}]} {
    %c0 = arith.constant 0 : index
    %c0_0 = arith.constant 0 : index
    %0 = vector.load %arg5[%c0, %c0_0] : memref<8x4xbf16, #tpu.memory_space<vmem>>, vector<8x4xbf16>
    %c0_1 = arith.constant 0 : index
    %c0_2 = arith.constant 0 : index
    %c0_3 = arith.constant 0 : index
    %1 = vector.load %arg4[%c0_1, %c0_2, %c0_3] : memref<1x4x16xf32, #tpu.memory_space<vmem>>, vector<1x4x16xf32>
    %2 = vector.shape_cast %1 : vector<1x4x16xf32> to vector<4x16xf32>
    %3 = arith.truncf %2 : vector<4x16xf32> to vector<4x16xbf16>
    %cst = arith.constant dense<0.000000e+00> : vector<8x16xf32>
    %4 = tpu.matmul %0, %3, %cst {dimension_numbers = #tpu.dot_dimension_numbers<[1], [0], [0], [1], [0, 0, 1, 1], [], []>} : vector<8x4xbf16>, vector<4x16xbf16>, vector<8x16xf32> -> vector<8x16xf32>
    %c0_4 = arith.constant 0 : index
    %c0_5 = arith.constant 0 : index
    %5 = vector.load %arg6[%c0_4, %c0_5] : memref<8x1xf32, #tpu.memory_space<vmem>>, vector<8x1xf32>
    %6 = vector.broadcast %5 : vector<8x1xf32> to vector<8x16xf32>
    %7 = arith.addf %4, %6 : vector<8x16xf32>
    %c0_6 = arith.constant 0 : index
    %c0_7 = arith.constant 0 : index
    %c0_8 = arith.constant 0 : index
    %8 = vector.load %arg1[%c0_6, %c0_7, %c0_8] : memref<1x8x16xf32, #tpu.memory_space<vmem>>, vector<1x8x16xf32>
    %9 = vector.shape_cast %8 : vector<1x8x16xf32> to vector<8x16xf32>
    %c0_9 = arith.constant 0 : index
    %c0_10 = arith.constant 0 : index
    %10 = vector.load %arg2[%c0_9, %c0_10] : memref<8x1xf32, #tpu.memory_space<vmem>>, vector<8x1xf32>
    %11 = vector.broadcast %10 : vector<8x1xf32> to vector<8x16xf32>
    %12 = arith.mulf %9, %11 : vector<8x16xf32>
    %c0_11 = arith.constant 0 : index
    %c0_12 = arith.constant 0 : index
    %13 = vector.load %arg3[%c0_11, %c0_12] : memref<8x1xf32, #tpu.memory_space<vmem>>, vector<8x1xf32>
    %14 = vector.broadcast %13 : vector<8x1xf32> to vector<8x16xf32>
    %15 = arith.addf %12, %14 : vector<8x16xf32>
    %16 = arith.addf %7, %15 : vector<8x16xf32>
    %cst_13 = arith.constant 0.000000e+00 : f32
    %17 = vector.broadcast %cst_13 : f32 to vector<8x16xf32>
    %18 = arith.cmpf oge, %16, %17 : vector<8x16xf32>
    %cst_14 = arith.constant 0.00999999977 : f32
    %19 = vector.broadcast %cst_14 : f32 to vector<8x16xf32>
    %20 = arith.mulf %19, %16 : vector<8x16xf32>
    %21 = arith.select %18, %16, %20 : vector<8x16xi1>, vector<8x16xf32>
    %c0_15 = arith.constant 0 : index
    %c0_16 = arith.constant 0 : index
    %c0_17 = arith.constant 0 : index
    %22 = vector.load %arg8[%c0_15, %c0_16, %c0_17] : memref<1x8x16xf32, #tpu.memory_space<vmem>>, vector<1x8x16xf32>
    %23 = vector.shape_cast %22 : vector<1x8x16xf32> to vector<8x16xf32>
    %24 = vector.shape_cast %21 : vector<8x16xf32> to vector<1x8x16xf32>
    tpu.vector_store %arg8[%c0_15, %c0_16, %c0_17], %24 {strides = array<i32>} : memref<1x8x16xf32, #tpu.memory_space<vmem>>, vector<1x8x16xf32>,
    %cst_18 = arith.constant 0.000000e+00 : f32
    %25 = vector.broadcast %cst_18 : f32 to vector<8x1xf32>
    %26 = vector.extract_strided_slice %21 {offsets = [0, 0], sizes = [8, 15], strides = [1, 1]} : vector<8x16xf32> to vector<8x15xf32>
    %27 = tpu.concatenate %25, %26 in 1 : vector<8x1xf32>, vector<8x15xf32> -> vector<8x16xf32>
    %28 = vector.extract_strided_slice %21 {offsets = [0, 1], sizes = [8, 15], strides = [1, 1]} : vector<8x16xf32> to vector<8x15xf32>
    %29 = tpu.concatenate %28, %25 in 1 : vector<8x15xf32>, vector<8x1xf32> -> vector<8x16xf32>
    %30 = tpu.concatenate %27, %21, %29 in 0 : vector<8x16xf32>, vector<8x16xf32>, vector<8x16xf32> -> vector<24x16xf32>
    %31 = arith.truncf %30 : vector<24x16xf32> to vector<24x16xbf16>
    %c0_19 = arith.constant 0 : index
    %c0_20 = arith.constant 0 : index
    %32 = vector.load %arg7[%c0_19, %c0_20] : memref<8x24xbf16, #tpu.memory_space<vmem>>, vector<8x24xbf16>
    %cst_21 = arith.constant dense<0.000000e+00> : vector<8x16xf32>
    %33 = tpu.matmul %32, %31, %cst_21 {dimension_numbers = #tpu.dot_dimension_numbers<[1], [0], [0], [1], [0, 0, 1, 1], [], []>} : vector<8x24xbf16>, vector<24x16xbf16>, vector<8x16xf32> -> vector<8x16xf32>
    %c0_22 = arith.constant 0 : index
    %c0_23 = arith.constant 0 : index
    %c0_24 = arith.constant 0 : index
    %34 = vector.load %arg9[%c0_22, %c0_23, %c0_24] : memref<1x8x16xf32, #tpu.memory_space<vmem>>, vector<1x8x16xf32>
    %35 = vector.shape_cast %34 : vector<1x8x16xf32> to vector<8x16xf32>
    %36 = vector.shape_cast %33 : vector<8x16xf32> to vector<1x8x16xf32>
    tpu.vector_store %arg9[%c0_22, %c0_23, %c0_24], %36 {strides = array<i32>} : memref<1x8x16xf32, #tpu.memory_space<vmem>>, vector<1x8x16xf32>,
    %cst_25 = arith.constant dense<0.000000e+00> : vector<8xf32>
    %37 = vector.multi_reduction <add>, %33, %cst_25 [1] : vector<8x16xf32> to vector<8xf32>
    %38 = vector.shape_cast %37 : vector<8xf32> to vector<8x1xf32>
    %39 = arith.mulf %33, %33 : vector<8x16xf32>
    %cst_26 = arith.constant dense<0.000000e+00> : vector<8xf32>
    %40 = vector.multi_reduction <add>, %39, %cst_26 [1] : vector<8x16xf32> to vector<8xf32>
    %41 = vector.shape_cast %40 : vector<8xf32> to vector<8x1xf32>
    %42 = tpu.concatenate %38, %41 in 1 : vector<8x1xf32>, vector<8x1xf32> -> vector<8x2xf32>
    %c0_27 = arith.constant 0 : index
    %c0_28 = arith.constant 0 : index
    %c0_29 = arith.constant 0 : index
    %43 = vector.load %arg10[%c0_27, %c0_28, %c0_29] : memref<1x8x2xf32, #tpu.memory_space<vmem>>, vector<1x8x2xf32>
    %44 = vector.shape_cast %43 : vector<1x8x2xf32> to vector<8x2xf32>
    %45 = vector.shape_cast %42 : vector<8x2xf32> to vector<1x8x2xf32>
    tpu.vector_store %arg10[%c0_27, %c0_28, %c0_29], %45 {strides = array<i32>} : memref<1x8x2xf32, #tpu.memory_space<vmem>>, vector<1x8x2xf32>,
    return
  }
  func.func @transform_0(%arg0: i32) -> (i32, i32, i32) {
    %c0_i32 = arith.constant 0 : i32
    %c0_i32_0 = arith.constant 0 : i32
    %c0_i32_1 = arith.constant 0 : i32
    return %arg0, %c0_i32, %c0_i32_0 : i32, i32, i32
  }
  func.func @transform_1(%arg0: i32) -> (i32, i32) {
    %c0_i32 = arith.constant 0 : i32
    %c0_i32_0 = arith.constant 0 : i32
    %c0_i32_1 = arith.constant 0 : i32
    return %c0_i32, %c0_i32_0 : i32, i32
  }
  func.func @transform_2(%arg0: i32) -> (i32, i32) {
    %c0_i32 = arith.constant 0 : i32
    %c0_i32_0 = arith.constant 0 : i32
    %c0_i32_1 = arith.constant 0 : i32
    return %c0_i32, %c0_i32_0 : i32, i32
  }
  func.func @transform_3(%arg0: i32) -> (i32, i32, i32) {
    %c0_i32 = arith.constant 0 : i32
    %c0_i32_0 = arith.constant 0 : i32
    %c0_i32_1 = arith.constant 0 : i32
    return %arg0, %c0_i32, %c0_i32_0 : i32, i32, i32
  }
  func.func @transform_4(%arg0: i32) -> (i32, i32) {
    %c0_i32 = arith.constant 0 : i32
    %c0_i32_0 = arith.constant 0 : i32
    %c0_i32_1 = arith.constant 0 : i32
    return %c0_i32, %c0_i32_0 : i32, i32
  }
  func.func @transform_5(%arg0: i32) -> (i32, i32) {
    %c0_i32 = arith.constant 0 : i32
    %c0_i32_0 = arith.constant 0 : i32
    %c0_i32_1 = arith.constant 0 : i32
    return %c0_i32, %c0_i32_0 : i32, i32
  }
  func.func @transform_6(%arg0: i32) -> (i32, i32) {
    %c0_i32 = arith.constant 0 : i32
    %c0_i32_0 = arith.constant 0 : i32
    %c0_i32_1 = arith.constant 0 : i32
    return %c0_i32, %c0_i32_0 : i32, i32
  }
  func.func @transform_7(%arg0: i32) -> (i32, i32, i32) {
    %c0_i32 = arith.constant 0 : i32
    %c0_i32_0 = arith.constant 0 : i32
    %c0_i32_1 = arith.constant 0 : i32
    return %arg0, %c0_i32, %c0_i32_0 : i32, i32, i32
  }
  func.func @transform_8(%arg0: i32) -> (i32, i32, i32) {
    %c0_i32 = arith.constant 0 : i32
    %c0_i32_0 = arith.constant 0 : i32
    %c0_i32_1 = arith.constant 0 : i32
    return %arg0, %c0_i32, %c0_i32_0 : i32, i32, i32
  }
  func.func @transform_9(%arg0: i32) -> (i32, i32, i32) {
    %c0_i32 = arith.constant 0 : i32
    %c0_i32_0 = arith.constant 0 : i32
    %c0_i32_1 = arith.constant 0 : i32
    return %arg0, %c0_i32, %c0_i32_0 : i32, i32, i32
  }
}

</mosaic_0001>

<bundles_post_ra>
// kernel: res_double_conv.5
= control target key start
LH: loop header
LB: loop body
LE: loop exit
PB: predicated region body
PF: predicated region fallthrough
CT: control target
= control target key end

     0   :  { %s364_s12 = smov 0   ;;  %s393_s0 = inlined_call_operand.vmem [shape: f32[2,4,16], index: 0, kind: input, shape index: {}]   ;;  %s394_s1 = inlined_call_operand.vmem [shape: bf16[8,12], index: 1, kind: input, shape index: {}]   ;;  %s395_s2 = inlined_call_operand.vmem [shape: f32[2,8,16], index: 2, kind: output, shape index: {0}]   ;;  %s396_s3 = inlined_call_operand.vmem [shape: f32[2,8,2], index: 3, kind: output, shape index: {1}]  }
   0x1 LB: > { %s313_s13 = sadd.s32 4294967295, %s340_s12   ;;  %p317_p0 = scmp.ge.s32.totalorder %s340_s12, 1  ;;  %s340_s12 = sphi %s364_s12, %s14_s12  }
   0x2   : > { %p139_p1 = scmp.lt.s32.totalorder %s340_s12, 3 }
   0x4   : > { %p140_p2 = pnand %p317_p0, %p139_p1 }
   0x5   : > { %p165_p3 = scmp.lt.s32.totalorder (!%p140_p2), %s313_s13, 1  ;;  %s342_s18 = smov (!%p140_p2), 1  }
   0x6   : > { %143 = sbr.rel (%p140_p2) target bundleno = 398 (0x18e), region = 28  ;;  %s343_s19 = smov (!%p140_p2), 127  }
   0xb   : > { %s398_s13 = smov (!%p165_p3, %s313_s13), 1  ;;  %vm183_vm0 = vcmask 7168   ;;  %vm188_vm1 = vcmask 121856   ;;  %vm192_vm2 = vcmask 1043456   ;;  %vm200_vm3 = vcmask 1045504  }
   0xc   : > { %s318_s14 = sshll.u32 %s398_s13, 2  ;;  %v195_v9 = vld [vmem:[%s394_s1] sm:$0xf]  ;;  %vm196_vm4 = vcmask 97280   ;;  %s319_s22 = sshll.u32 %s398_s13, 3  ;;  %vm217_vm5 = vcmask 130048  }
   0xd   : > { %s168_s17 = scalar_lea.vmem %s393_s0, %s318_s14  ;;  %s172_s25 = scalar_lea.vmem %s395_s2, %s319_s22  ;;  %vm227_vm6 = vcmask 15360  }
   0xe   : > { %v178_v0 = vld [vmem:[%s168_s17] sm:$0xf]  ;;  %s176_s28 = scalar_lea.vmem %s396_s3, %s319_s22 }
   0xf   : > { %180 = vrot.lane.b32.xlu0 %v178_v0, %s342_s18  ;;  %v190_v2 = vrot.slane %v178_v0, 4 }
  0x17   : > { %185 = vrot.lane.b32.xlu0 %v178_v0, %s343_s19 }
  0x81   : > { %v181_v1 = vpop.permute.xlu0 %180 }
  0x82   : > { %v184_v3 = vsel %vm183_vm0, 0.0, %v181_v1 }
  0x83   : > { %v193_v6 = vsel %vm192_vm2, %v184_v3, %v190_v2 }
  0x89   : > { %v186_v4 = vpop.permute.xlu0 %185 }
  0x8a   : > { %v189_v5 = vsel %vm188_vm1, %v186_v4, 0.0 }
  0x8b   : > { %v194_v7 = vpack.c.bf16 %v189_v5, %v193_v6 }
  0x8d   : > { %v202_v8 = vsel %vm200_vm3, %v194_v7, 0 }
  0x8e   : > { %211 = vmatpush.bf16.msra.mxu0 %v202_v8 }
  0x91   : > { %321 = vmatmul.msk.bf16.vlgmr.msra.gmra.mxu0 %vm196_vm4, %v195_v9 }
 0x10e   : > { %v213_v10 = vpop.f32.mrf.mxu0 }
 0x10f   : > { %v219_v11 = vsel %vm217_vm5, %v213_v10, 0.0  ;;  %218 = vst.msk [vmem:[%s172_s25] sm:$0xff] %vm217_vm5, %v213_v10  ;;  %v222_v12 = vmul.f32 %v213_v10, %v213_v10 }
 0x110   : > { %220 = vadd.xlane.f32.xlu1 %v219_v11 }
 0x111   : > { %v223_v14 = vsel %vm217_vm5, %v222_v12, 0.0 }
 0x116   : > { %v215_v13 = vpop.f32.mrf.mxu0 }
 0x118   : > { %224 = vadd.xlane.f32.xlu1 %v223_v14 }
 0x183   : > { %v221_v15 = vpop.xlane.xlu1 %220 }
 0x18b   : > { %v225_v16 = vpop.xlane.xlu1 %224 }
 0x18c   : > { %v226_v17 = vsel %vm183_vm0, %v221_v15, %v225_v16 }
 0x18d   : > { %228 = vst.msk [vmem:[%s176_s28] sm:$0xff] %vm227_vm6, %v226_v17 }
 0x18e PF: > { %s14_s12 = sadd.s32 1, %s340_s12  }
 0x18f   : > { %p11_p4 = scmp.ge.s32.totalorder %s14_s12, 4  }
 0x191   :  { %13 = sbr.rel (!%p11_p4) target bundleno = 1 (0x1), region = 70 }

// kernel: res_double_conv.9
= control target key start
LH: loop header
LB: loop body
LE: loop exit
PB: predicated region body
PF: predicated region fallthrough
CT: control target
= control target key end

     0   :  { %9 = vsyncpa [#allocation3], 0  ;;  %s555_s0 = inlined_call_operand.vmem [shape: f32[2,8,16], index: 0, kind: input, shape index: {}]   ;;  %s556_s1 = inlined_call_operand.vmem [shape: f32[8,1], index: 1, kind: input, shape index: {}]   ;;  %s557_s2 = inlined_call_operand.vmem [shape: f32[8,1], index: 2, kind: input, shape index: {}]   ;;  %s558_s3 = inlined_call_operand.vmem [shape: f32[2,8,16], index: 3, kind: input, shape index: {}]   ;;  %s559_s4 = inlined_call_operand.hbm [shape: f32[2,8,16], index: 4, kind: output, shape index: {}]  }
   0x1   :  { %11 = vsyncpa [#allocation3 + $0x1], 0  ;;  %s461_s15 = smov 0   ;;  %s463_s16 = smov 0  }
   0x2   :  { %s465_s17 = smov 0   ;;  %s467_s18 = smov 0  }
   0x3 LB: > { %s482_s19 = sadd.s32 4294967295, %s433_s18   ;;  %s319_s20 = sadd.s32 4294967294, %s433_s18   ;;  %s433_s18 = sphi %s467_s18, %s565_s18   ;;  %s429_s17 = sphi %s465_s17, %s564_s17   ;;  %s425_s16 = sphi %s463_s16, %s563_s16   ;;  %s421_s15 = sphi %s461_s15, %s562_s15  }
   0x4   : > { %s486_s21 = sadd.s32 1, %s433_s18   ;;  %s118_s22 = sadd.s32 1, %s429_s17 }
   0x5   : > { %s115_s23 = ssub.s32 %s433_s18, %s486_s21  ;;  %p128_p0 = scmp.ne.s32.totalorder %s429_s17, %s425_s16 }
   0x6   : > { %p116_p1 = scmp.eq.s32.totalorder %s115_s23, 0  ;;  %p129_p2 = scmp.eq.s32.totalorder %s482_s19, 1 }
   0x7   : > { %p134_p3 = scmp.ne.s32.totalorder %s425_s16, %s421_s15  ;;  %p135_p4 = scmp.eq.s32.totalorder %s319_s20, 1 }
   0x8   : > { %s497_s24 = scalar_select %p116_p1, %s429_s17, %s118_s22  }
   0x9   : > { %p499_p5 = por %p129_p2, %p128_p0  ;;  %p503_p6 = por %p135_p4, %p134_p3 }
   0xa   : > { %p322_p7 = scmp.ge.s32.totalorder %s433_s18, 1  ;;  %p173_p8 = scmp.lt.s32.totalorder %s433_s18, 3 }
   0xc   : > { %p174_p9 = pnand %p322_p7, %p173_p8 }
   0xd   : > { %p202_p10 = scmp.lt.s32.totalorder (!%p174_p9), %s482_s19, 1  ;;  %s199_s10 = sand.u32 (!%p174_p9), 1, %s425_s16  }
   0xe   : > { %177 = sbr.rel (%p174_p9) target bundleno = 154 (0x9a), region = 36  ;;  %s323_s11 = sshll.u32 (!%p174_p9), %s199_s10, 3 }
   0xf   : > { %s327_s20 = sshll.u32 (!%p174_p9), %s482_s19, 3  ;;  %s201_s28 = scalar_lea.vmem (!%p174_p9), [#allocation2], %s323_s11 }
  0x10   : > { %s243_s27 = scalar_lea.hbm (!%p174_p9), %s559_s4, %s327_s20  ;;  %s245_s29 = sshll.u32 (!%p174_p9), %s201_s28, 4  ;;  %s246_s29 = int_to_ptr.vmem [resolvable:$true] %s245_s29 }
  0x11   : > { %s247_s30 = sshll.u32 (!%p174_p9), %s243_s27, 4  ;;  %s248_s30 = int_to_ptr.hbm [resolvable:$true] %s247_s30 }
  0x13   : > { %v211_v0 = vld [vmem:[%s556_s1] sm:$0xff]  ;;  %v435_v1 = vmov 0   ;;  %s203_s5 = scalar_select %p202_p10, %s482_s19, 1  ;;  %vm230_vm1 = vcmask 130048  }
  0x14   : > { %370 = vset.pattern.permute.xlu0 %v435_v1  ;;  %v218_v2 = vld [vmem:[%s557_s2] sm:$0xff]  ;;  %s233_s19 = scalar_lea.sflag [#allocation3], %s199_s10 }
  0x15   : > { %214 = vperm.xlu0 %370, %v211_v0   ;;  %s324_s6 = sshll.u32 %s203_s5, 3  ;;  %s385_s5 = sshra.s32 %s248_s30, 4  ;;  %s386_s5 = int_to_ptr.hbm [resolvable:$true] %s385_s5 }
  0x16   : > { %s205_s9 = scalar_lea.vmem %s555_s0, %s324_s6  ;;  %s209_s14 = scalar_lea.vmem %s558_s3, %s324_s6 }
  0x17   : > { %v210_v4 = vld [vmem:[%s205_s9] sm:$0xff]  ;;  %s387_s6 = scalar_lea.hbm %s386_s5, 8  ;;  %s391_s9 = scalar_lea.hbm %s559_s4, 16 }
  0x18   : > { %v225_v7 = vld [vmem:[%s209_s14] sm:$0xff]  ;;  %p388_p11 = scmp.ne.s32.totalorder %s386_s5, %s387_s6  ;;  %p392_p0 = scmp.lt.s32.totalorder %s386_s5, %s559_s4 }
  0x19   : > { %p393_p1 = scmp.lt.s32.totalorder %s391_s9, %s387_s6 }
  0x1a   : > { %p389_p12 = pnand %p388_p11, %p499_p5 }
  0x1b   : > { %p394_p2 = por %p393_p1, %p392_p0 }
  0x1c   : > { %p390_p13 = pneg %p389_p12 }
  0x1d   : > { %221 = vperm.xlu0 %370, %v218_v2  }
  0x1e   : > { %p395_p3 = pnand %p394_p2, %p390_p13 }
  0x87   : > { %v215_v3 = vpop.permute.xlu0 %214 }
  0x88   : > { %v217_v5 = vmul.f32 %v215_v3, %v210_v4 }
  0x8f   : > { %v222_v6 = vpop.permute.xlu0 %221 }
  0x90   : > { %v224_v8 = vadd.f32 %v222_v6, %v217_v5 }
  0x92   : > { %v226_v9 = vadd.f32 %v225_v7, %v224_v8 }
  0x94   : > { %vm227_vm0 = vcmp.ge.f32.partialorder %v226_v9, 0.0  ;;  %v228_v10 = vmul.f32 0.01, %v226_v9 }
  0x96   : > { %v229_v11 = vsel %vm227_vm0, %v226_v9, %v228_v10 }
  0x97   : > { %231 = vst.msk [vmem:[%s201_s28] sm:$0xff] %vm230_vm1, %v229_v11 }
  0x98   : > { %398 = shalt.err (!%p395_p3)
}
  0x99   : > { %330 = dma.vmem_to_hbm [thread:$0]  (%p499_p5), %s246_s29, 128, %s248_s30, %s233_s19  }
  0x9a PF: > { %p336_p4 = scmp.ge.s32.totalorder %s433_s18, 2  ;;  %s259_s10 = sand.u32 1, %s421_s15  }
  0x9b   : > { %s260_s13 = scalar_lea.sflag [#allocation3], %s259_s10 }
  0x9c   : > { %p333_p7 = pnand %p336_p4, %p503_p6 }
  0x9e   : > { %p334_p8 = pneg %p333_p7 }
  0xa0   : > { %416 = dma.done.wait (%p334_p8), %s260_s13, 128  }
  0xa1   : > { %418 = vsyncadd (%p334_p8), %s260_s13, 4294967168  ;;  %p14_p9 = scmp.ge.s32.totalorder %s486_s21, 4   ;;  %s562_s15 = smov %s425_s16 }
  0xa2   : > { %s563_s16 = smov %s429_s17  ;;  %s564_s17 = smov %s497_s24 }
  0xa3   : > { %s565_s18 = smov %s486_s21  ;;  %16 = sbr.rel (!%p14_p9) target bundleno = 3 (0x3), region = 74 }
  0xa8   :  { %266 = vsyncpa [#allocation3], 1 }
  0xa9   :  { %268 = vsyncpa [#allocation3 + $0x1], 1 }

// kernel: res_double_conv.6
= control target key start
LH: loop header
LB: loop body
LE: loop exit
PB: predicated region body
PF: predicated region fallthrough
CT: control target
= control target key end

     0   :  { %s448_s18 = smov 0   ;;  %s484_s0 = inlined_call_operand.vmem [shape: f32[2,8,16], index: 0, kind: input, shape index: {}]   ;;  %s485_s1 = inlined_call_operand.vmem [shape: f32[8,1], index: 1, kind: input, shape index: {}]   ;;  %s486_s2 = inlined_call_operand.vmem [shape: f32[8,1], index: 2, kind: input, shape index: {}]   ;;  %s487_s3 = inlined_call_operand.vmem [shape: bf16[8,24], index: 3, kind: input, shape index: {}]   ;;  %s488_s4 = inlined_call_operand.vmem [shape: f32[2,8,16], index: 4, kind: output, shape index: {0}]   ;;  %s489_s5 = inlined_call_operand.vmem [shape: f32[2,8,2], index: 5, kind: output, shape index: {1}]  }
   0x1 LB: > { %s378_s19 = sadd.s32 4294967295, %s412_s18   ;;  %p382_p0 = scmp.ge.s32.totalorder %s412_s18, 1  ;;  %s412_s18 = sphi %s448_s18, %s16_s18  }
   0x2   : > { %p189_p1 = scmp.lt.s32.totalorder %s412_s18, 3 }
   0x4   : > { %p190_p2 = pnand %p382_p0, %p189_p1 }
   0x5   : > { %p219_p3 = scmp.lt.s32.totalorder (!%p190_p2), %s378_s19, 1  ;;  %s415_s28 = smov (!%p190_p2), 127  }
   0x6   : > { %193 = sbr.rel (%p190_p2) target bundleno = 519 (0x207), region = 36  ;;  %s416_s29 = smov (!%p190_p2), 1  }
   0xb   : > { %v233_v0 = vld [vmem:[%s485_s1] sm:$0xff]  ;;  %v414_v1 = vmov 0   ;;  %s491_s19 = smov (!%p219_p3, %s378_s19), 1  ;;  %vm256_vm0 = vcmask 121856   ;;  %vm265_vm1 = vcmask 1043456   ;;  %vm251_vm2 = vcmask 7168  }
   0xc   : > { %405 = vset.pattern.permute.xlu0 %v414_v1  ;;  %v240_v2 = vld [vmem:[%s486_s2] sm:$0xff]  ;;  %s462_s24 = sshll.u32 %s491_s19, 3  ;;  %vm386_vm3 = vmneg %vm251_vm2  ;;  %vm417_vm4 = vmmov 1   ;;  %vm261_vm6 = vcmask 195584   ;;  %vm282_vm7 = vcmask 130048   ;;  %vm292_vm8 = vcmask 15360  }
   0xd   : > { %236 = vperm.xlu0 %405, %v233_v0   ;;  %s222_s27 = scalar_lea.vmem %s484_s0, %s462_s24  ;;  %vm387_vm5 = vmpackc.low %vm417_vm4, %vm386_vm3  ;;  %v260_v14 = vld [vmem:[%s487_s3] sm:$0xf]  ;;  %s226_s9 = scalar_lea.vmem %s488_s4, %s462_s24 }
   0xe   : > { %v232_v4 = vld [vmem:[%s222_s27] sm:$0xff]  ;;  %s230_s12 = scalar_lea.vmem %s489_s5, %s462_s24 }
  0x15   : > { %243 = vperm.xlu0 %405, %v240_v2  }
  0x7f   : > { %v237_v3 = vpop.permute.xlu0 %236 }
  0x80   : > { %v239_v5 = vmul.f32 %v237_v3, %v232_v4 }
  0x87   : > { %v244_v6 = vpop.permute.xlu0 %243 }
  0x88   : > { %v246_v7 = vadd.f32 %v244_v6, %v239_v5 }
  0x8a   : > { %253 = vrot.lane.b32.xlu1 %v246_v7, %s415_s28 }
  0x92   : > { %248 = vrot.lane.b32.xlu1 %v246_v7, %s416_s29 }
  0xfc   : > { %v254_v8 = vpop.permute.xlu1 %253 }
  0xfd   : > { %v257_v9 = vsel %vm256_vm0, %v254_v8, 0.0 }
  0xfe   : > { %v259_v10 = vpack.c.bf16 %v257_v9, %v257_v9 }
 0x100   : > { %v267_v11 = vsel %vm265_vm1, %v259_v10, 0 }
 0x101   : > { %275 = vmatpush.bf16.msra.mxu0 %v267_v11 }
 0x104   : > { %v249_v12 = vpop.permute.xlu1 %248 }
 0x105   : > { %v388_v13 = vpack.c.bf16 %v246_v7, %v249_v12 }
 0x107   : > { %389 = vmatpush.bf16.msk.msra.mxu0 %vm387_vm5, %v388_v13 }
 0x10a   : > { %390 = vmatmul.msk.bf16.vlgmr.msra.gmra.mxu0 %vm261_vm6, %v260_v14 }
 0x187   : > { %v278_v15 = vpop.f32.mrf.mxu0 }
 0x188   : > { %v284_v16 = vsel %vm282_vm7, %v278_v15, 0.0  ;;  %283 = vst.msk [vmem:[%s226_s9] sm:$0xff] %vm282_vm7, %v278_v15  ;;  %v287_v17 = vmul.f32 %v278_v15, %v278_v15 }
 0x189   : > { %285 = vadd.xlane.f32.xlu2 %v284_v16 }
 0x18a   : > { %v288_v19 = vsel %vm282_vm7, %v287_v17, 0.0 }
 0x18f   : > { %v280_v18 = vpop.f32.mrf.mxu0 }
 0x191   : > { %289 = vadd.xlane.f32.xlu2 %v288_v19 }
 0x1fc   : > { %v286_v20 = vpop.xlane.xlu2 %285 }
 0x204   : > { %v290_v21 = vpop.xlane.xlu2 %289 }
 0x205   : > { %v291_v22 = vsel %vm251_vm2, %v286_v20, %v290_v21 }
 0x206   : > { %293 = vst.msk [vmem:[%s230_s12] sm:$0xff] %vm292_vm8, %v291_v22 }
 0x207 PF: > { %s16_s18 = sadd.s32 1, %s412_s18  }
 0x208   : > { %p13_p4 = scmp.ge.s32.totalorder %s16_s18, 4  }
 0x20a   :  { %15 = sbr.rel (!%p13_p4) target bundleno = 1 (0x1), region = 78 }

// kernel: res_double_conv.7
= control target key start
LH: loop header
LB: loop body
LE: loop exit
PB: predicated region body
PF: predicated region fallthrough
CT: control target
= control target key end

     0   :  { %s685_s30 = smov 0   ;;  %s738_s0 = inlined_call_operand.vmem [shape: f32[2,8,16], index: 0, kind: input, shape index: {}]   ;;  %s739_s1 = inlined_call_operand.vmem [shape: f32[8,1], index: 1, kind: input, shape index: {}]   ;;  %s740_s2 = inlined_call_operand.vmem [shape: f32[8,1], index: 2, kind: input, shape index: {}]   ;;  %s741_s3 = inlined_call_operand.vmem [shape: f32[2,4,16], index: 3, kind: input, shape index: {}]   ;;  %s742_s4 = inlined_call_operand.vmem [shape: bf16[8,4], index: 4, kind: input, shape index: {}]   ;;  %s743_s5 = inlined_call_operand.vmem [shape: f32[8,1], index: 5, kind: input, shape index: {}]   ;;  %s744_s6 = inlined_call_operand.vmem [shape: bf16[8,24], index: 6, kind: input, shape index: {}]   ;;  %s745_s7 = inlined_call_operand.vmem [shape: f32[2,8,16], index: 7, kind: output, shape index: {0}]   ;;  %s746_s8 = inlined_call_operand.vmem [shape: f32[2,8,16], index: 8, kind: output, shape index: {1}]   ;;  %s747_s9 = inlined_call_operand.vmem [shape: f32[2,8,2], index: 9, kind: output, shape index: {2}]  }
   0x1 LB: > { %s591_s10 = sadd.s32 4294967295, %s629_s30   ;;  %p595_p0 = scmp.ge.s32.totalorder %s629_s30, 1  ;;  %s629_s30 = sphi %s685_s30, %s20_s30  }
   0x2   : > { %p300_p1 = scmp.lt.s32.totalorder %s629_s30, 3 }
   0x4   : > { %p301_p2 = pnand %p595_p0, %p300_p1 }
   0x5   : > { %p346_p3 = scmp.lt.s32.totalorder (!%p301_p2), %s591_s10, 1  ;;  %s633_s11 = smov (!%p301_p2), 127  }
   0x6   : > { %304 = sbr.rel (%p301_p2) target bundleno = 527 (0x20f), region = 48 }
   0xb   : > { %v398_v0 = vld [vmem:[%s739_s1] sm:$0xff]  ;;  %v631_v1 = vmov 0   ;;  %s749_s10 = smov (!%p346_p3, %s591_s10), 1  ;;  %vm380_vm0 = vcmask 1041408   ;;  %vm376_vm1 = vcmask 31744   ;;  %vm416_vm3 = vcmask 130048  }
   0xc   : > { %621 = vset.pattern.permute.xlu0 %v631_v1  ;;  %622 = vset.pattern.permute.xlu1 %v631_v1  ;;  %v405_v2 = vld [vmem:[%s740_s2] sm:$0xff]  ;;  %s597_s15 = sshll.u32 %s749_s10, 2  ;;  %s708_s23 = sshll.u32 %s749_s10, 3  ;;  %vm427_vm4 = vcmask 121856   ;;  %vm422_vm5 = vcmask 7168   ;;  %vm436_vm6 = vcmask 1043456  }
   0xd   : > { %401 = vperm.xlu0 %621, %v398_v0   ;;  %408 = vperm.xlu1 %622, %v405_v2   ;;  %s353_s18 = scalar_lea.vmem %s741_s3, %s597_s15  ;;  %v370_v5 = vld [vmem:[%s743_s5] sm:$0xff]  ;;  %s349_s26 = scalar_lea.vmem %s738_s0, %s708_s23  ;;  %vm602_vm7 = vmneg %vm422_vm5  ;;  %vm634_vm8 = vmmov 1   ;;  %vm432_vm10 = vcmask 195584   ;;  %vm462_vm11 = vcmask 15360  }
   0xe   : > { %v368_v3 = vld [vmem:[%s353_s18] sm:$0xf]  ;;  %s357_s29 = scalar_lea.vmem %s745_s7, %s708_s23  ;;  %s632_s10 = smov 1   ;;  %vm603_vm9 = vmpackc.low %vm634_vm8, %vm602_vm7 }
   0xf   : > { %v369_v4 = vpack.c.bf16 %v368_v3, %v368_v3  ;;  %v367_v7 = vld [vmem:[%s742_s4] sm:$0xf]  ;;  %s361_s16 = scalar_lea.vmem %s746_s8, %s708_s23  ;;  %s365_s19 = scalar_lea.vmem %s747_s9, %s708_s23 }
  0x10   : > { %v397_v9 = vld [vmem:[%s349_s26] sm:$0xff] }
  0x11   : > { %v382_v6 = vsel %vm380_vm0, %v369_v4, 0  ;;  %v431_v26 = vld [vmem:[%s744_s6] sm:$0xf] }
  0x12   : > { %391 = vmatpush.bf16.msra.mxu0 %v382_v6 }
  0x15   : > { %373 = vperm.xlu0 %621, %v370_v5   ;;  %601 = vmatmul.msk.bf16.vlgmr.msra.gmra.mxu0 %vm376_vm1, %v367_v7 }
  0x7f   : > { %v402_v8 = vpop.permute.xlu0 %401  ;;  %v409_v11 = vpop.permute.xlu1 %408 }
  0x80   : > { %v404_v10 = vmul.f32 %v402_v8, %v397_v9 }
  0x82   : > { %v411_v14 = vadd.f32 %v409_v11, %v404_v10 }
  0x87   : > { %v374_v12 = vpop.permute.xlu0 %373 }
  0x92   : > { %v393_v13 = vpop.f32.mrf.mxu0 }
  0x93   : > { %v394_v15 = vadd.f32 %v393_v13, %v374_v12 }
  0x95   : > { %v412_v16 = vadd.f32 %v411_v14, %v394_v15 }
  0x97   : > { %v414_v17 = vmul.f32 0.01, %v412_v16  ;;  %vm413_vm2 = vcmp.ge.f32.partialorder %v412_v16, 0.0 }
  0x99   : > { %v415_v18 = vsel %vm413_vm2, %v412_v16, %v414_v17 }
  0x9a   : > { %v395_v19 = vpop.f32.mrf.mxu0  ;;  %419 = vrot.lane.b32.xlu2 %v415_v18, %s632_s10  ;;  %424 = vrot.lane.b32.xlu1 %v415_v18, %s633_s11  ;;  %417 = vst.msk [vmem:[%s357_s29] sm:$0xff] %vm416_vm3, %v415_v18 }
  0xf4   : > { %v420_v23 = vpop.permute.xlu2 %419 }
  0xf5   : > { %v604_v25 = vpack.c.bf16 %v415_v18, %v420_v23 }
 0x10c   : > { %v425_v20 = vpop.permute.xlu1 %424 }
 0x10d   : > { %v428_v21 = vsel %vm427_vm4, %v425_v20, 0.0 }
 0x10e   : > { %v430_v22 = vpack.c.bf16 %v428_v21, %v428_v21 }
 0x110   : > { %v438_v24 = vsel %vm436_vm6, %v430_v22, 0 }
 0x111   : > { %446 = vmatpush.bf16.msra.mxu1 %v438_v24 }
 0x115   : > { %605 = vmatpush.bf16.msk.msra.mxu1 %vm603_vm9, %v604_v25 }
 0x118   : > { %606 = vmatmul.msk.bf16.vlgmr.msra.gmra.mxu1 %vm432_vm10, %v431_v26 }
 0x195   : > { %v449_v27 = vpop.f32.mrf.mxu1 }
 0x196   : > { %453 = vst.msk [vmem:[%s361_s16] sm:$0xff] %vm416_vm3, %v449_v27  ;;  %v454_v28 = vsel %vm416_vm3, %v449_v27, 0.0  ;;  %v457_v29 = vmul.f32 %v449_v27, %v449_v27 }
 0x197   : > { %455 = vadd.xlane.f32.xlu2 %v454_v28 }
 0x198   : > { %v458_v30 = vsel %vm416_vm3, %v457_v29, 0.0 }
 0x199   : > { %459 = vadd.xlane.f32.xlu0 %v458_v30 }
 0x19d   : > { %v451_v31 = vpop.f32.mrf.mxu1 }
 0x20a   : > { %v456_v32 = vpop.xlane.xlu2 %455 }
 0x20c   : > { %v460_v33 = vpop.xlane.xlu0 %459 }
 0x20d   : > { %v461_v34 = vsel %vm422_vm5, %v456_v32, %v460_v33 }
 0x20e   : > { %463 = vst.msk [vmem:[%s365_s19] sm:$0xff] %vm462_vm11, %v461_v34 }
 0x20f PF: > { %s20_s30 = sadd.s32 1, %s629_s30  }
 0x210   : > { %p17_p4 = scmp.ge.s32.totalorder %s20_s30, 4  }
 0x212   :  { %19 = sbr.rel (!%p17_p4) target bundleno = 1 (0x1), region = 105 }

</bundles_post_ra>
